<compile_context>
chip_gen: v5e
topology: v5e:2x2
jax: 0.10.0
libtpu: 0.0.40
codegen_flags: <defaults>
</compile_context>

<pallas_src>
import functools

import jax
import jax.numpy as jnp
from jax.experimental import pallas as pl
from jax.experimental.pallas import tpu as pltpu


_FAST_PATH_MAX_B = 128  # below this, launch/latency dominates -> single-invocation path


def _round_up(x: int, m: int) -> int:
    return ((x + m - 1) // m) * m


def _mlp_kernel(x_ref, w1_ref, b1_ref, w2_ref, b2_ref, w3_ref, b3_ref, o_ref):
    # Cast the streamed f32 x tile to bf16 in-register (VPU) for native MXU throughput.
    x = x_ref[...].astype(w1_ref.dtype)
    # fc1 + ReLU (f32 accumulation on the MXU)
    h1 = jnp.dot(x, w1_ref[...], preferred_element_type=jnp.float32) + b1_ref[...]
    h1 = jnp.maximum(h1, 0.0).astype(w2_ref.dtype)
    # fc2 + ReLU
    h2 = jnp.dot(h1, w2_ref[...], preferred_element_type=jnp.float32) + b2_ref[...]
    h2 = jnp.maximum(h2, 0.0).astype(w3_ref.dtype)
    # fc3 (no activation); output block is (tb, action_dim) -> no padded writeback
    out = jnp.dot(h2, w3_ref[...], preferred_element_type=jnp.float32) + b3_ref[...]
    o_ref[...] = out.astype(o_ref.dtype)


def _cost_estimate(B, state_dim, width, action_dim):
    flops = 2 * B * (state_dim * width + width * width + width * action_dim)
    bytes_accessed = (
        B * state_dim * 4                                                   # x (f32)
        + (state_dim * width + width * width + width * action_dim) * 2      # weights (bf16)
        + (2 * width + action_dim) * 4                                      # biases (f32)
        + B * action_dim * 4                                                # output (f32)
    )
    return pl.CostEstimate(flops=flops, transcendentals=0, bytes_accessed=bytes_accessed)


def prepare_params(w1, b1, w2, b2, w3, b3):
    """One-time prep: matmul operands -> bf16, biases -> f32.

    Weights are [in_features, out_features] (transpose of PyTorch [out, in]),
    biases are [1, out_features].
    """
    return (
        w1.astype(jnp.bfloat16), b1.astype(jnp.float32),
        w2.astype(jnp.bfloat16), b2.astype(jnp.float32),
        w3.astype(jnp.bfloat16), b3.astype(jnp.float32),
    )


@functools.partial(jax.jit, static_argnames=("block_b",))
def mlp_forward(x, w1, b1, w2, b2, w3, b3, *, block_b: int = 2048):
    """Fused 3-layer MLP forward. x: [B, state_dim] f32 -> [B, action_dim] f32."""
    B, state_dim = x.shape
    width = w1.shape[1]
    action_dim = w3.shape[1]

    cost = _cost_estimate(B, state_dim, width, action_dim)
    out_shape = jax.ShapeDtypeStruct((B, action_dim), jnp.float32)
    args = (x, w1, b1, w2, b2, w3, b3)

    # ---------- small-batch fast path: single invocation, everything VMEM-resident ----------
    if B <= _FAST_PATH_MAX_B:
        vmem = pl.BlockSpec(memory_space=pltpu.MemorySpace.VMEM)
        return pl.pallas_call(
            _mlp_kernel,
            out_shape=out_shape,
            in_specs=[vmem] * 7,
            out_specs=vmem,
            cost_estimate=cost,
        )(*args)

    # ---------- large-batch path: stream batch tiles, weights stay VMEM-resident ----------
    # 8-sublane aligned tile, capped at ceil(B/2) so the grid has >= 2 steps (v7x megacore).
    tb = min(block_b, _round_up(pl.cdiv(B, 2), 8))
    tb = max(8, _round_up(tb, 8))
    grid = (pl.cdiv(B, tb),)  # ragged last block: rows independent, OOB rows never written

    def resident(a):
        # Same block index every grid step -> operand stays VMEM-resident (no re-DMA).
        return pl.BlockSpec(a.shape, lambda i: (0,) * a.ndim)

    return pl.pallas_call(
        _mlp_kernel,
        out_shape=out_shape,
        grid=grid,
        in_specs=[
            pl.BlockSpec((tb, state_dim), lambda i: (i, 0)),  # x: streamed batch tiles
            resident(w1), resident(b1),
            resident(w2), resident(b2),
            resident(w3), resident(b3),
        ],
        out_specs=pl.BlockSpec((tb, action_dim), lambda i: (i, 0)),
        compiler_params=pltpu.CompilerParams(dimension_semantics=("parallel",)),
        cost_estimate=cost,
    )(*args)


def init_params(key, state_dim, action_dim, width=128):
    """Deterministic init mimicking PyTorch nn.Linear default (uniform +/- 1/sqrt(fan_in)).
    Weights stored already transposed to [in, out]; biases as [1, out]."""
    ks = jax.random.split(key, 6)

    def linear(kw, kb, fan_in, fan_out):
        bound = 1.0 / jnp.sqrt(jnp.float32(fan_in))
        w = jax.random.uniform(kw, (fan_in, fan_out), jnp.float32, -bound, bound)
        b = jax.random.uniform(kb, (1, fan_out), jnp.float32, -bound, bound)
        return w, b

    w1, b1 = linear(ks[0], ks[1], state_dim, width)
    w2, b2 = linear(ks[2], ks[3], width, width)
    w3, b3 = linear(ks[4], ks[5], width, action_dim)
    return w1, b1, w2, b2, w3, b3


if __name__ == "__main__":
    state_dim, action_dim, width, batch = 8, 4, 128, 2

    key = jax.random.PRNGKey(0)
    k_params, k_x = jax.random.split(key)
    w1, b1, w2, b2, w3, b3 = init_params(k_params, state_dim, action_dim, width)
    params = prepare_params(w1, b1, w2, b2, w3, b3)  # one-time bf16 cast of weights
    x = jax.random.normal(k_x, (batch, state_dim), jnp.float32)

    out = jax.block_until_ready(mlp_forward(x, *params))

    # pure-JAX reference with the same bf16 quantization of matmul operands
    def q(a):
        return a.astype(jnp.bfloat16).astype(jnp.float32)

    def ref_fwd(a):
        h = jnp.maximum(jnp.dot(q(a), q(w1)) + b1, 0.0)
        h = jnp.maximum(jnp.dot(q(h), q(w2)) + b2, 0.0)
        return jnp.dot(q(h), q(w3)) + b3

    ref = ref_fwd(x)
    assert out.shape == (batch, action_dim)
    assert jnp.allclose(out, ref, atol=2e-2, rtol=2e-2), (
        f"max abs err = {jnp.max(jnp.abs(out - ref))}"
    )

    # also exercise the gridded, ragged-last-block path (B not a tile multiple)
    xl = jax.random.normal(jax.random.PRNGKey(1), (1000, state_dim), jnp.float32)
    out_l = jax.block_until_ready(mlp_forward(xl, *params))
    ref_l = ref_fwd(xl)
    assert out_l.shape == (1000, action_dim)
    assert jnp.allclose(out_l, ref_l, atol=2e-2, rtol=2e-2), (
        f"max abs err (large) = {jnp.max(jnp.abs(out_l - ref_l))}"
    )

    print("KERNEL_OK")
</pallas_src>

<mosaic_0001>
module attributes {stable_mosaic.version = 11 : i64} {
  func.func @_mlp_kernel(%arg0: memref<2x8xf32, #tpu.memory_space<vmem>>, %arg1: memref<8x128xbf16, #tpu.memory_space<vmem>>, %arg2: memref<1x128xf32, #tpu.memory_space<vmem>>, %arg3: memref<128x128xbf16, #tpu.memory_space<vmem>>, %arg4: memref<1x128xf32, #tpu.memory_space<vmem>>, %arg5: memref<128x4xbf16, #tpu.memory_space<vmem>>, %arg6: memref<1x4xf32, #tpu.memory_space<vmem>>, %arg7: memref<2x4xf32, #tpu.memory_space<vmem>>) attributes {dimension_semantics = [], scalar_prefetch = 0 : i64, scratch_operands = 0 : i64, tpu.core_type = #tpu.core_type<tc>} {
    %c0 = arith.constant 0 : index
    %c0_0 = arith.constant 0 : index
    %0 = vector.load %arg0[%c0, %c0_0] : memref<2x8xf32, #tpu.memory_space<vmem>>, vector<2x8xf32>
    %1 = arith.truncf %0 : vector<2x8xf32> to vector<2x8xbf16>
    %c0_1 = arith.constant 0 : index
    %c0_2 = arith.constant 0 : index
    %2 = vector.load %arg1[%c0_1, %c0_2] : memref<8x128xbf16, #tpu.memory_space<vmem>>, vector<8x128xbf16>
    %cst = arith.constant dense<0.000000e+00> : vector<2x128xf32>
    %3 = tpu.matmul %1, %2, %cst {dimension_numbers = #tpu.dot_dimension_numbers<[1], [0], [0], [1], [0, 0, 1, 1], [], []>} : vector<2x8xbf16>, vector<8x128xbf16>, vector<2x128xf32> -> vector<2x128xf32>
    %c0_3 = arith.constant 0 : index
    %c0_4 = arith.constant 0 : index
    %4 = vector.load %arg2[%c0_3, %c0_4] : memref<1x128xf32, #tpu.memory_space<vmem>>, vector<1x128xf32>
    %5 = vector.broadcast %4 : vector<1x128xf32> to vector<2x128xf32>
    %6 = arith.addf %3, %5 : vector<2x128xf32>
    %cst_5 = arith.constant 0.000000e+00 : f32
    %7 = vector.broadcast %cst_5 : f32 to vector<2x128xf32>
    %8 = arith.maximumf %6, %7 : vector<2x128xf32>
    %9 = arith.truncf %8 : vector<2x128xf32> to vector<2x128xbf16>
    %c0_6 = arith.constant 0 : index
    %c0_7 = arith.constant 0 : index
    %10 = vector.load %arg3[%c0_6, %c0_7] : memref<128x128xbf16, #tpu.memory_space<vmem>>, vector<128x128xbf16>
    %cst_8 = arith.constant dense<0.000000e+00> : vector<2x128xf32>
    %11 = tpu.matmul %9, %10, %cst_8 {dimension_numbers = #tpu.dot_dimension_numbers<[1], [0], [0], [1], [0, 0, 1, 1], [], []>} : vector<2x128xbf16>, vector<128x128xbf16>, vector<2x128xf32> -> vector<2x128xf32>
    %c0_9 = arith.constant 0 : index
    %c0_10 = arith.constant 0 : index
    %12 = vector.load %arg4[%c0_9, %c0_10] : memref<1x128xf32, #tpu.memory_space<vmem>>, vector<1x128xf32>
    %13 = vector.broadcast %12 : vector<1x128xf32> to vector<2x128xf32>
    %14 = arith.addf %11, %13 : vector<2x128xf32>
    %cst_11 = arith.constant 0.000000e+00 : f32
    %15 = vector.broadcast %cst_11 : f32 to vector<2x128xf32>
    %16 = arith.maximumf %14, %15 : vector<2x128xf32>
    %17 = arith.truncf %16 : vector<2x128xf32> to vector<2x128xbf16>
    %c0_12 = arith.constant 0 : index
    %c0_13 = arith.constant 0 : index
    %18 = vector.load %arg5[%c0_12, %c0_13] : memref<128x4xbf16, #tpu.memory_space<vmem>>, vector<128x4xbf16>
    %cst_14 = arith.constant dense<0.000000e+00> : vector<2x4xf32>
    %19 = tpu.matmul %17, %18, %cst_14 {dimension_numbers = #tpu.dot_dimension_numbers<[1], [0], [0], [1], [0, 0, 1, 1], [], []>} : vector<2x128xbf16>, vector<128x4xbf16>, vector<2x4xf32> -> vector<2x4xf32>
    %c0_15 = arith.constant 0 : index
    %c0_16 = arith.constant 0 : index
    %20 = vector.load %arg6[%c0_15, %c0_16] : memref<1x4xf32, #tpu.memory_space<vmem>>, vector<1x4xf32>
    %21 = vector.broadcast %20 : vector<1x4xf32> to vector<2x4xf32>
    %22 = arith.addf %19, %21 : vector<2x4xf32>
    %c0_17 = arith.constant 0 : index
    %c0_18 = arith.constant 0 : index
    %23 = vector.load %arg7[%c0_17, %c0_18] : memref<2x4xf32, #tpu.memory_space<vmem>>, vector<2x4xf32>
    tpu.vector_store %arg7[%c0_17, %c0_18], %22 {strides = array<i32>} : memref<2x4xf32, #tpu.memory_space<vmem>>, vector<2x4xf32>,
    return
  }
}

</mosaic_0001>

<bundles_post_ra>
// kernel: mlp_forward.1
= control target key start
LH: loop header
LB: loop body
LE: loop exit
PB: predicated region body
PF: predicated region fallthrough
CT: control target
= control target key end

     0   :  { %12 = vsyncpa [#allocation3], 0  ;;  %s583_s0 = inlined_call_operand.hbm [shape: f32[2,8], index: 0, kind: input, shape index: {}]   ;;  %s584_s1 = inlined_call_operand.vmem [shape: bf16[8,128], index: 1, kind: input, shape index: {}]   ;;  %s585_s2 = inlined_call_operand.hbm [shape: f32[1,128], index: 2, kind: input, shape index: {}]   ;;  %s586_s3 = inlined_call_operand.vmem [shape: bf16[128,128], index: 3, kind: input, shape index: {}]   ;;  %s587_s4 = inlined_call_operand.hbm [shape: f32[1,128], index: 4, kind: input, shape index: {}]   ;;  %s588_s5 = inlined_call_operand.vmem [shape: bf16[128,4], index: 5, kind: input, shape index: {}]   ;;  %s589_s6 = inlined_call_operand.vmem [shape: f32[1,4], index: 6, kind: input, shape index: {}]   ;;  %s590_s7 = inlined_call_operand.hbm [shape: f32[2,4], index: 7, kind: output, shape index: {}]  }
   0x1   :  { %13 = vsyncpa [#allocation6], 0  ;;  %s33_s26 = sshll.u32 %s585_s2, 4  ;;  %s34_s26 = int_to_ptr.hbm [resolvable:$true] %s33_s26 }
   0x2   :  { %14 = vsyncpa [#allocation4], 0  ;;  %s473_s27 = smov [#allocation5]   ;;  %s20_s8 = sshll.u32 %s583_s0, 4  ;;  %s21_s8 = int_to_ptr.hbm [resolvable:$true] %s20_s8 }
   0x3   :  { %s35_s28 = sshll.u32 %s473_s27, 4  ;;  %s474_s9 = smov [#allocation2]   ;;  %s36_s28 = int_to_ptr.vmem [resolvable:$true] %s35_s28 }
   0x4   :  { %38 = dma.hbm_to_vmem [thread:$0]  %s34_s26, 16, %s36_s28, [#allocation6]  }
   0x5   :  { %s22_s10 = sshll.u32 %s474_s9, 4  ;;  %s46_s13 = sshll.u32 %s587_s4, 4  ;;  %s23_s10 = int_to_ptr.vmem [resolvable:$true] %s22_s10  ;;  %s47_s13 = int_to_ptr.hbm [resolvable:$true] %s46_s13 }
   0x6   :  { %25 = dma.hbm_to_vmem [thread:$0]  %s21_s8, 32, %s23_s10, [#allocation3]  }
   0x7   :  { %s475_s2 = smov [#allocation7]  }
   0x8   :  { %s48_s14 = sshll.u32 %s475_s2, 4  ;;  %s49_s14 = int_to_ptr.vmem [resolvable:$true] %s48_s14 }
   0x9   :  { %51 = dma.hbm_to_vmem [thread:$0]  %s47_s13, 16, %s49_s14, [#allocation6]  }
   0xa   :  { %467 = dma.done.wait [#allocation3], 32  }
   0xb   :  { %468 = vsyncadd [#allocation3], 4294967264 }
   0xc   :  { %469 = dma.done.wait [#allocation6], 32  }
   0xd   :  { %470 = vsyncadd [#allocation6], 4294967264  ;;  %vm80_vm0 = vcmask 1043456   ;;  %v71_v0 = vld [vmem:[%s584_s1] sm:$0xf]  ;;  %v355_v2 = vld [vmem:[%s586_s3 + $0x38] sm:$0xff] }
   0xe   :  { %v69_v1 = vld [vmem:[#allocation2] sm:$0x3]  ;;  %v82_v3 = vsel %vm80_vm0, %v71_v0, 0  ;;  %vm76_vm1 = vcmask 64512   ;;  %167 = vmatpush.bf16.msra.mxu1 %v355_v2  ;;  %v354_v5 = vld [vmem:[%s586_s3 + $0x30] sm:$0xff]  ;;  %v353_v6 = vld [vmem:[%s586_s3 + $0x28] sm:$0xff] }
   0xf   :  { %v70_v4 = vpack.c.bf16 %v69_v1, %v69_v1  ;;  %91 = vmatpush.bf16.msra.mxu0 %v82_v3  ;;  %v352_v7 = vld [vmem:[%s586_s3 + $0x20] sm:$0xff]  ;;  %v351_v8 = vld [vmem:[%s586_s3 + $0x18] sm:$0xff]  ;;  %v350_v9 = vld [vmem:[%s586_s3 + $0x10] sm:$0xff]  ;;  %s476_s1 = smov [#allocation8]   ;;  %s272_s24 = sshll.u32 %s590_s7, 4  ;;  %vm263_vm2 = vcmask 25600   ;;  %s273_s24 = int_to_ptr.hbm [resolvable:$true] %s272_s24 }
  0x10   :  { %v349_v10 = vld [vmem:[%s586_s3 + $0x8] sm:$0xff]  ;;  %v348_v11 = vld [vmem:[%s586_s3] sm:$0xff]  ;;  %v363_v12 = vld [vmem:[%s588_s5 + $0x38] sm:$0xff]  ;;  %s270_s21 = sshll.u32 %s476_s1, 4  ;;  %s271_s21 = int_to_ptr.vmem [resolvable:$true] %s270_s21 }
  0x11   :  { %250 = vmatpush.bf16.msra.mxu2 %v363_v12  ;;  %v362_v13 = vld [vmem:[%s588_s5 + $0x30] sm:$0xff]  ;;  %v361_v14 = vld [vmem:[%s588_s5 + $0x28] sm:$0xff]  ;;  %v360_v15 = vld [vmem:[%s588_s5 + $0x20] sm:$0xff] }
  0x12   :  { %283 = vmatmul.msk.bf16.vlgmr.msra.gmra.mxu0 %vm76_vm1, %v70_v4  ;;  %168 = vmatpush.bf16.msra.mxu1 %v354_v5  ;;  %v359_v16 = vld [vmem:[%s588_s5 + $0x18] sm:$0xff]  ;;  %v358_v17 = vld [vmem:[%s588_s5 + $0x10] sm:$0xff]  ;;  %v368_v18 = vld [vmem:[#allocation5] ss:$0 sm:$0xff] }
  0x13   :  { %v357_v24 = vld [vmem:[%s588_s5 + $0x8] sm:$0xff]  ;;  %v356_v25 = vld [vmem:[%s588_s5] sm:$0xff] }
  0x14   :  { %v369_v26 = vld [vmem:[#allocation7] ss:$0 sm:$0xff]  ;;  %v370_v32 = vld [vmem:[%s589_s6] ss:$0 sm:$0xff] }
  0x15   :  { %251 = vmatpush.bf16.msra.mxu2 %v362_v13 }
  0x16   :  { %169 = vmatpush.bf16.msra.mxu1 %v353_v6 }
  0x19   :  { %252 = vmatpush.bf16.msra.mxu2 %v361_v14 }
  0x1a   :  { %170 = vmatpush.bf16.msra.mxu1 %v352_v7 }
  0x1d   :  { %253 = vmatpush.bf16.msra.mxu2 %v360_v15 }
  0x1e   :  { %171 = vmatpush.bf16.msra.mxu1 %v351_v8 }
  0x21   :  { %254 = vmatpush.bf16.msra.mxu2 %v359_v16 }
  0x22   :  { %172 = vmatpush.bf16.msra.mxu1 %v350_v9 }
  0x25   :  { %255 = vmatpush.bf16.msra.mxu2 %v358_v17 }
  0x26   :  { %173 = vmatpush.bf16.msra.mxu1 %v349_v10 }
  0x29   :  { %256 = vmatpush.bf16.msra.mxu2 %v357_v24 }
  0x2a   :  { %174 = vmatpush.bf16.msra.mxu1 %v348_v11 }
  0x2d   :  { %257 = vmatpush.bf16.msra.mxu2 %v356_v25 }
  0x8f   :  { %v93_v19 = vpop.f32.mrf.mxu0 }
  0x90   :  { %v94_v20 = vadd.f32 %v368_v18, %v93_v19 }
  0x92   :  { %v97_v21 = vmax.f32 %v94_v20, 0.0 }
  0x94   :  { %v98_v22 = vpack.c.bf16 %v97_v21, %v97_v21 }
  0x96   :  { %175 = vmatmul.bf16.vlgmr.msra.gmra.mxu1 %v98_v22 }
  0x97   :  { %v95_v23 = vpop.f32.mrf.mxu0 }
 0x113   :  { %v176_v27 = vpop.f32.mrf.mxu1 }
 0x114   :  { %v177_v28 = vadd.f32 %v369_v26, %v176_v27 }
 0x116   :  { %v180_v29 = vmax.f32 %v177_v28, 0.0 }
 0x118   :  { %v181_v30 = vpack.c.bf16 %v180_v29, %v180_v29 }
 0x11a   :  { %258 = vmatmul.bf16.vlgmr.msra.gmra.mxu2 %v181_v30 }
 0x11b   :  { %v178_v31 = vpop.f32.mrf.mxu1 }
 0x19d   :  { %v259_v33 = vpop.f32.mrf.mxu2 }
 0x19e   :  { %v260_v34 = vadd.f32 %v370_v32, %v259_v33 }
 0x1a0   :  { %264 = vst.msk [vmem:[#allocation8] sm:$0x3] %vm263_vm2, %v260_v34 }
 0x1a1   :  { %275 = dma.vmem_to_hbm [thread:$0]  %s271_s21, 32, %s273_s24, [#allocation4]  }
 0x1a5   :  { %v261_v35 = vpop.f32.mrf.mxu2 }
 0x1a6   :  { %471 = dma.done.wait [#allocation4], 32  }
 0x1a7   :  { %472 = vsyncadd [#allocation4], 4294967264 }
 0x1a8   :  { %280 = vsyncpa [#allocation3], 1 }
 0x1a9   :  { %281 = vsyncpa [#allocation6], 1 }
 0x1aa   :  { %282 = vsyncpa [#allocation4], 1 }

</bundles_post_ra>
